<compile_context>
chip_gen: v6e
topology: v6e:2x2x1
jax: 0.10.0
libtpu: 0.0.40
codegen_flags: <defaults>
</compile_context>

<pallas_src>
import functools

import jax
import jax.numpy as jnp
from jax import lax
from jax.experimental import pallas as pl
from jax.experimental.pallas import tpu as pltpu

KERNEL_SIZE = 3
LANE = 128


def _gelu_exact(x):
    # PyTorch F.gelu default: 0.5 * x * (1 + erf(x / sqrt(2)))
    return 0.5 * x * (1.0 + lax.erf(x * jnp.float32(0.7071067811865476)))


def conv_block_kernel(x_ref, w1_ref, b1_ref, w2_ref, b2_ref, o_ref,
                      *, dilation, true_len, mm_dtype):
    d = dilation
    x = x_ref[0]                       # (C, Lp) f32, zero-padded beyond true_len
    C, Lp = x.shape

    def shifted_stack(a):
        # Build the fused-conv operand: rows [0,C) = a[l-d], [C,2C) = a[l],
        # [2C,3C) = a[l+d]; out-of-range columns are zero (SamePadConv padding).
        z = jnp.zeros((a.shape[0], d), a.dtype)
        left = jnp.concatenate([z, a[:, :Lp - d]], axis=1)    # tap t=0 -> a[l-d]
        right = jnp.concatenate([a[:, d:], z], axis=1)        # tap t=2 -> a[l+d]
        return jnp.concatenate([left, a, right], axis=0).astype(mm_dtype)

    # --- conv1: single fused (C_out, 3C) x (3C, Lp) matmul -----------------
    g = _gelu_exact(x)                 # gelu(0) == 0 keeps lane padding exact
    y1 = jnp.dot(w1_ref[...], shifted_stack(g),
                 preferred_element_type=jnp.float32) + b1_ref[...]

    h = _gelu_exact(y1)
    if true_len < Lp:
        # Zero the lane-padding region so conv2's right tap sees true zero
        # padding (conv1 output there is nonzero garbage fed by real columns).
        lane_idx = lax.broadcasted_iota(jnp.int32, h.shape, 1)
        h = jnp.where(lane_idx < true_len, h, 0.0)

    # --- conv2 --------------------------------------------------------------
    y2 = jnp.dot(w2_ref[...], shifted_stack(h),
                 preferred_element_type=jnp.float32) + b2_ref[...]

    # --- residual add (projector is None when downsampling=False) ----------
    o_ref[0] = (y2 + x).astype(o_ref.dtype)


def conv_block(x, w1, b1, w2, b2, dilation, *, matmul_dtype=jnp.bfloat16):
    """ConvBlock forward.  x: (B, C, L) float32 (NCL, matching nn.Conv1d)."""
    B, C_in, L = x.shape
    C_out = w1.shape[0]
    assert C_in == C_out, "no-downsampling ConvBlock requires in==out channels"
    d = int(dilation)
    assert d >= 1

    # Lane-align the time axis so all loads/stores are full 128-lane vectors.
    L_pad = max(LANE, ((L + LANE - 1) // LANE) * LANE)
    assert d < L_pad
    x_f32 = x.astype(jnp.float32)
    x_in = x_f32 if L_pad == L else jnp.pad(
        x_f32, ((0, 0), (0, 0), (0, L_pad - L)))

    # Fuse the 3 taps: (C_out, C_in, 3) -> (C_out, 3*C_in), tap-major columns.
    def fuse(w):
        return jnp.concatenate([w[:, :, t] for t in range(KERNEL_SIZE)], axis=1)

    w1f = fuse(w1).astype(matmul_dtype)
    w2f = fuse(w2).astype(matmul_dtype)
    b1r = b1.reshape(C_out, 1).astype(jnp.float32)
    b2r = b2.reshape(C_out, 1).astype(jnp.float32)

    kernel = functools.partial(conv_block_kernel, dilation=d, true_len=L,
                               mm_dtype=matmul_dtype)

    out = pl.pallas_call(
        kernel,
        out_shape=jax.ShapeDtypeStruct((B, C_out, L_pad), x.dtype),
        grid_spec=pltpu.PrefetchScalarGridSpec(
            num_scalar_prefetch=0,
            grid=(B,),
            in_specs=[
                pl.BlockSpec((1, C_in, L_pad), lambda b: (b, 0, 0)),
                pl.BlockSpec((C_out, KERNEL_SIZE * C_in), lambda b: (0, 0)),
                pl.BlockSpec((C_out, 1), lambda b: (0, 0)),
                pl.BlockSpec((C_out, KERNEL_SIZE * C_out), lambda b: (0, 0)),
                pl.BlockSpec((C_out, 1), lambda b: (0, 0)),
            ],
            out_specs=pl.BlockSpec((1, C_out, L_pad), lambda b: (b, 0, 0)),
        ),
        compiler_params=pltpu.CompilerParams(
            dimension_semantics=("parallel",),
            vmem_limit_bytes=48 * 1024 * 1024,
        ),
    )(x_in, w1f, b1r, w2f, b2r)

    return out[:, :, :L] if L_pad != L else out


# ----------------------------- pure-JAX reference ---------------------------
def _ref_conv1d_same(x, w, b, d):
    B, Ci, L = x.shape
    xp = jnp.pad(x, ((0, 0), (0, 0), (d, d)))
    out = jnp.zeros((B, w.shape[0], L), jnp.float32)
    for t in range(KERNEL_SIZE):
        out = out + jnp.einsum('oc,bcl->bol', w[:, :, t],
                               xp[:, :, t * d: t * d + L])
    return out + b[None, :, None]


def _ref_conv_block(x, w1, b1, w2, b2, d):
    def gelu(v):
        return 0.5 * v * (1.0 + lax.erf(v / jnp.sqrt(2.0)))
    residual = x
    h = gelu(x)
    h = _ref_conv1d_same(h, w1, b1, d)
    h = gelu(h)
    h = _ref_conv1d_same(h, w2, b2, d)
    return h + residual


if __name__ == "__main__":
    B, C, L = 2, 4, 16
    dilation = 2

    key = jax.random.PRNGKey(0)
    kx, k1, k2, k3, k4 = jax.random.split(key, 5)

    x = jax.random.normal(kx, (B, C, L), dtype=jnp.float32)
    # Conv1d(C, C, 3) weights: (out_channels, in_channels, kernel_size)
    w1 = 0.3 * jax.random.normal(k1, (C, C, KERNEL_SIZE), dtype=jnp.float32)
    b1 = 0.1 * jax.random.normal(k2, (C,), dtype=jnp.float32)
    w2 = 0.3 * jax.random.normal(k3, (C, C, KERNEL_SIZE), dtype=jnp.float32)
    b2 = 0.1 * jax.random.normal(k4, (C,), dtype=jnp.float32)

    ref = _ref_conv_block(x, w1, b1, w2, b2, dilation)

    # f32 MXU path: bit-level structural check against the reference.
    out_f32 = jax.block_until_ready(
        conv_block(x, w1, b1, w2, b2, dilation, matmul_dtype=jnp.float32))
    assert out_f32.shape == (B, C, L)
    assert jnp.allclose(out_f32, ref, atol=1e-4, rtol=1e-4), (
        f"f32 max err {jnp.max(jnp.abs(out_f32 - ref))}")

    # Default bf16-operand / f32-accumulate path (wider tolerance).
    out_bf16 = jax.block_until_ready(conv_block(x, w1, b1, w2, b2, dilation))
    assert out_bf16.shape == (B, C, L)
    assert jnp.allclose(out_bf16, ref, atol=1e-1, rtol=5e-2), (
        f"bf16 max err {jnp.max(jnp.abs(out_bf16 - ref))}")

    print("KERNEL_OK")
</pallas_src>

<mosaic_0001>
module attributes {stable_mosaic.version = 11 : i64} {
  func.func @conv_block_kernel(%arg0: i32, %arg1: memref<1x4x128xf32, #tpu.memory_space<vmem>>, %arg2: memref<4x12xf32, #tpu.memory_space<vmem>>, %arg3: memref<4x1xf32, #tpu.memory_space<vmem>>, %arg4: memref<4x12xf32, #tpu.memory_space<vmem>>, %arg5: memref<4x1xf32, #tpu.memory_space<vmem>>, %arg6: memref<1x4x128xf32, #tpu.memory_space<vmem>>) attributes {dimension_semantics = [#tpu.dimension_semantics<parallel>], iteration_bounds = array<i64: 2>, scalar_prefetch = 0 : i64, scratch_operands = 0 : i64, tpu.core_type = #tpu.core_type<tc>, window_params = [{transform_indices = @transform_0, window_bounds = array<i64: 1, 4, 128>}, {pipeline_mode = #tpu.pipeline_mode<synchronous>, transform_indices = @transform_1, window_bounds = array<i64: 4, 12>}, {pipeline_mode = #tpu.pipeline_mode<synchronous>, transform_indices = @transform_2, window_bounds = array<i64: 4, 1>}, {pipeline_mode = #tpu.pipeline_mode<synchronous>, transform_indices = @transform_3, window_bounds = array<i64: 4, 12>}, {pipeline_mode = #tpu.pipeline_mode<synchronous>, transform_indices = @transform_4, window_bounds = array<i64: 4, 1>}, {transform_indices = @transform_5, window_bounds = array<i64: 1, 4, 128>}]} {
    %c0 = arith.constant 0 : index
    %c0_0 = arith.constant 0 : index
    %c0_1 = arith.constant 0 : index
    %0 = vector.load %arg1[%c0, %c0_0, %c0_1] : memref<1x4x128xf32, #tpu.memory_space<vmem>>, vector<1x4x128xf32>
    %1 = vector.shape_cast %0 : vector<1x4x128xf32> to vector<4x128xf32>
    %cst = arith.constant 5.000000e-01 : f32
    %2 = vector.broadcast %cst : f32 to vector<4x128xf32>
    %3 = arith.mulf %2, %1 : vector<4x128xf32>
    %cst_2 = arith.constant 0.707106769 : f32
    %4 = vector.broadcast %cst_2 : f32 to vector<4x128xf32>
    %5 = arith.mulf %1, %4 : vector<4x128xf32>
    %6 = math.erf %5 : vector<4x128xf32>
    %cst_3 = arith.constant 1.000000e+00 : f32
    %7 = vector.broadcast %cst_3 : f32 to vector<4x128xf32>
    %8 = arith.addf %7, %6 : vector<4x128xf32>
    %9 = arith.mulf %3, %8 : vector<4x128xf32>
    %c0_4 = arith.constant 0 : index
    %c0_5 = arith.constant 0 : index
    %10 = vector.load %arg2[%c0_4, %c0_5] : memref<4x12xf32, #tpu.memory_space<vmem>>, vector<4x12xf32>
    %cst_6 = arith.constant 0.000000e+00 : f32
    %11 = vector.broadcast %cst_6 : f32 to vector<4x2xf32>
    %12 = vector.extract_strided_slice %9 {offsets = [0, 0], sizes = [4, 126], strides = [1, 1]} : vector<4x128xf32> to vector<4x126xf32>
    %13 = tpu.concatenate %11, %12 in 1 : vector<4x2xf32>, vector<4x126xf32> -> vector<4x128xf32>
    %14 = vector.extract_strided_slice %9 {offsets = [0, 2], sizes = [4, 126], strides = [1, 1]} : vector<4x128xf32> to vector<4x126xf32>
    %15 = tpu.concatenate %14, %11 in 1 : vector<4x126xf32>, vector<4x2xf32> -> vector<4x128xf32>
    %16 = tpu.concatenate %13, %9, %15 in 0 : vector<4x128xf32>, vector<4x128xf32>, vector<4x128xf32> -> vector<12x128xf32>
    %cst_7 = arith.constant dense<0.000000e+00> : vector<4x128xf32>
    %17 = tpu.matmul %10, %16, %cst_7 {dimension_numbers = #tpu.dot_dimension_numbers<[1], [0], [0], [1], [0, 0, 1, 1], [], []>} : vector<4x12xf32>, vector<12x128xf32>, vector<4x128xf32> -> vector<4x128xf32>
    %c0_8 = arith.constant 0 : index
    %c0_9 = arith.constant 0 : index
    %18 = vector.load %arg3[%c0_8, %c0_9] : memref<4x1xf32, #tpu.memory_space<vmem>>, vector<4x1xf32>
    %19 = vector.broadcast %18 : vector<4x1xf32> to vector<4x128xf32>
    %20 = arith.addf %17, %19 : vector<4x128xf32>
    %cst_10 = arith.constant 5.000000e-01 : f32
    %21 = vector.broadcast %cst_10 : f32 to vector<4x128xf32>
    %22 = arith.mulf %21, %20 : vector<4x128xf32>
    %cst_11 = arith.constant 0.707106769 : f32
    %23 = vector.broadcast %cst_11 : f32 to vector<4x128xf32>
    %24 = arith.mulf %20, %23 : vector<4x128xf32>
    %25 = math.erf %24 : vector<4x128xf32>
    %cst_12 = arith.constant 1.000000e+00 : f32
    %26 = vector.broadcast %cst_12 : f32 to vector<4x128xf32>
    %27 = arith.addf %26, %25 : vector<4x128xf32>
    %28 = arith.mulf %22, %27 : vector<4x128xf32>
    %29 = tpu.iota {dimensions = array<i32: 1>} : vector<4x128xi32>
    %c16_i32 = arith.constant 16 : i32
    %30 = vector.broadcast %c16_i32 : i32 to vector<4x128xi32>
    %31 = arith.cmpi slt, %29, %30 : vector<4x128xi32>
    %cst_13 = arith.constant 0.000000e+00 : f32
    %32 = vector.broadcast %cst_13 : f32 to vector<4x128xf32>
    %33 = arith.select %31, %28, %32 : vector<4x128xi1>, vector<4x128xf32>
    %c0_14 = arith.constant 0 : index
    %c0_15 = arith.constant 0 : index
    %34 = vector.load %arg4[%c0_14, %c0_15] : memref<4x12xf32, #tpu.memory_space<vmem>>, vector<4x12xf32>
    %cst_16 = arith.constant 0.000000e+00 : f32
    %35 = vector.broadcast %cst_16 : f32 to vector<4x2xf32>
    %36 = vector.extract_strided_slice %33 {offsets = [0, 0], sizes = [4, 126], strides = [1, 1]} : vector<4x128xf32> to vector<4x126xf32>
    %37 = tpu.concatenate %35, %36 in 1 : vector<4x2xf32>, vector<4x126xf32> -> vector<4x128xf32>
    %38 = vector.extract_strided_slice %33 {offsets = [0, 2], sizes = [4, 126], strides = [1, 1]} : vector<4x128xf32> to vector<4x126xf32>
    %39 = tpu.concatenate %38, %35 in 1 : vector<4x126xf32>, vector<4x2xf32> -> vector<4x128xf32>
    %40 = tpu.concatenate %37, %33, %39 in 0 : vector<4x128xf32>, vector<4x128xf32>, vector<4x128xf32> -> vector<12x128xf32>
    %cst_17 = arith.constant dense<0.000000e+00> : vector<4x128xf32>
    %41 = tpu.matmul %34, %40, %cst_17 {dimension_numbers = #tpu.dot_dimension_numbers<[1], [0], [0], [1], [0, 0, 1, 1], [], []>} : vector<4x12xf32>, vector<12x128xf32>, vector<4x128xf32> -> vector<4x128xf32>
    %c0_18 = arith.constant 0 : index
    %c0_19 = arith.constant 0 : index
    %42 = vector.load %arg5[%c0_18, %c0_19] : memref<4x1xf32, #tpu.memory_space<vmem>>, vector<4x1xf32>
    %43 = vector.broadcast %42 : vector<4x1xf32> to vector<4x128xf32>
    %44 = arith.addf %41, %43 : vector<4x128xf32>
    %45 = arith.addf %44, %1 : vector<4x128xf32>
    %c0_20 = arith.constant 0 : index
    %c0_21 = arith.constant 0 : index
    %c0_22 = arith.constant 0 : index
    %46 = vector.load %arg6[%c0_20, %c0_21, %c0_22] : memref<1x4x128xf32, #tpu.memory_space<vmem>>, vector<1x4x128xf32>
    %47 = vector.shape_cast %46 : vector<1x4x128xf32> to vector<4x128xf32>
    %48 = vector.shape_cast %45 : vector<4x128xf32> to vector<1x4x128xf32>
    tpu.vector_store %arg6[%c0_20, %c0_21, %c0_22], %48 {strides = array<i32>} : memref<1x4x128xf32, #tpu.memory_space<vmem>>, vector<1x4x128xf32>,
    return
  }
  func.func @transform_0(%arg0: i32) -> (i32, i32, i32) {
    %c0_i32 = arith.constant 0 : i32
    %c0_i32_0 = arith.constant 0 : i32
    %c0_i32_1 = arith.constant 0 : i32
    return %arg0, %c0_i32, %c0_i32_0 : i32, i32, i32
  }
  func.func @transform_1(%arg0: i32) -> (i32, i32) {
    %c0_i32 = arith.constant 0 : i32
    %c0_i32_0 = arith.constant 0 : i32
    %c0_i32_1 = arith.constant 0 : i32
    return %c0_i32, %c0_i32_0 : i32, i32
  }
  func.func @transform_2(%arg0: i32) -> (i32, i32) {
    %c0_i32 = arith.constant 0 : i32
    %c0_i32_0 = arith.constant 0 : i32
    %c0_i32_1 = arith.constant 0 : i32
    return %c0_i32, %c0_i32_0 : i32, i32
  }
  func.func @transform_3(%arg0: i32) -> (i32, i32) {
    %c0_i32 = arith.constant 0 : i32
    %c0_i32_0 = arith.constant 0 : i32
    %c0_i32_1 = arith.constant 0 : i32
    return %c0_i32, %c0_i32_0 : i32, i32
  }
  func.func @transform_4(%arg0: i32) -> (i32, i32) {
    %c0_i32 = arith.constant 0 : i32
    %c0_i32_0 = arith.constant 0 : i32
    %c0_i32_1 = arith.constant 0 : i32
    return %c0_i32, %c0_i32_0 : i32, i32
  }
  func.func @transform_5(%arg0: i32) -> (i32, i32, i32) {
    %c0_i32 = arith.constant 0 : i32
    %c0_i32_0 = arith.constant 0 : i32
    %c0_i32_1 = arith.constant 0 : i32
    return %arg0, %c0_i32, %c0_i32_0 : i32, i32, i32
  }
}

</mosaic_0001>

<bundles_post_ra>
// kernel: tpu_custom_call.1
= control target key start
LH: loop header
LB: loop body
LE: loop exit
PB: predicated region body
PF: predicated region fallthrough
CT: control target
= control target key end

     0   :  { %10 = vsyncpa [#allocation3], 0  ;;  %s888_s0 = inlined_call_operand.vmem [shape: f32[2,4,128], index: 0, kind: input, shape index: {}]   ;;  %s889_s1 = inlined_call_operand.hbm [shape: f32[4,12], index: 1, kind: input, shape index: {}]   ;;  %s890_s2 = inlined_call_operand.vmem [shape: f32[4,1], index: 2, kind: input, shape index: {}]   ;;  %s891_s3 = inlined_call_operand.vmem [shape: f32[4,12], index: 3, kind: input, shape index: {}]   ;;  %s892_s4 = inlined_call_operand.vmem [shape: f32[4,1], index: 4, kind: input, shape index: {}]   ;;  %s893_s5 = inlined_call_operand.hbm [shape: f32[2,4,128], index: 5, kind: output, shape index: {}]  }
   0x1   :  { %11 = vsyncpa [#allocation4], 0 }
   0x2   :  { %13 = vsyncpa [#allocation4 + $0x1], 0  ;;  %s755_s18 = smov 0   ;;  %s757_s19 = smov 0  }
   0x3   :  { %s759_s20 = smov 0   ;;  %s761_s21 = smov 0  }
   0x4 LB: > { %s776_s22 = sadd.s32 4294967295, %s716_s21   ;;  %s529_s23 = sadd.s32 4294967294, %s716_s21   ;;  %s716_s21 = sphi %s761_s21, %s901_s21   ;;  %s712_s20 = sphi %s759_s20, %s900_s20   ;;  %s708_s19 = sphi %s757_s19, %s899_s19   ;;  %s704_s18 = sphi %s755_s18, %s898_s18  }
   0x5   : > { %s780_s24 = sadd.s32 1, %s716_s21   ;;  %s136_s25 = sadd.s32 1, %s712_s20 }
   0x6   : > { %s133_s26 = ssub.s32 %s716_s21, %s780_s24  ;;  %p146_p0 = scmp.ne.s32.totalorder %s712_s20, %s708_s19 }
   0x7   : > { %p134_p1 = scmp.eq.s32.totalorder %s133_s26, 0  ;;  %p147_p2 = scmp.eq.s32.totalorder %s776_s22, 1 }
   0x8   : > { %p152_p3 = scmp.ne.s32.totalorder %s708_s19, %s704_s18  ;;  %p153_p4 = scmp.eq.s32.totalorder %s529_s23, 1 }
   0x9   : > { %s791_s27 = scalar_select %p134_p1, %s712_s20, %s136_s25  }
   0xa   : > { %p793_p5 = por %p147_p2, %p146_p0  ;;  %p797_p6 = por %p153_p4, %p152_p3 }
   0xb   : > { %p530_p7 = scmp.ge.s32.totalorder %s716_s21, 1  ;;  %p160_p8 = scmp.lt.s32.totalorder %s716_s21, 3 }
   0xc   : > { %s895_s29 = scalar_select %p797_p6, 1, 0 }
   0xd   : > { %p579_p9 = scmp.eq.s32.totalorder %s776_s22, 0  ;;  %p804_p10 = pnand %p530_p7, %p160_p8 }
   0xe   : > { %s718_s6 = smov [#allocation2]  }
   0xf   : > { %s173_s7 = sshll.u32 %s718_s6, 4  ;;  %p571_p11 = pneg %p804_p10  ;;  %s174_s7 = int_to_ptr.vmem [resolvable:$true] %s173_s7 }
  0x10   : > { %s637_s8 = scalar_lea.vmem %s174_s7, 64  ;;  %p645_p3 = scmp.lt.s32.totalorder %s174_s7, %s174_s7 }
  0x11   : > { %p572_p12 = pnand %p579_p9, %p571_p11  ;;  %p638_p0 = scmp.ne.s32.totalorder %s174_s7, %s637_s8 }
  0x12   : > { %p646_p4 = scmp.lt.s32.totalorder %s637_s8, %s637_s8 }
  0x13   : > { %p628_p13 = pneg %p572_p12 }
  0x14   : > { %p647_p6 = por %p646_p4, %p645_p3 }
  0x15   : > { %p640_p1 = pnand %p638_p0, %p628_p13 }
  0x17   : > { %p641_p2 = pneg %p640_p1 }
  0x19   : > { %p648_p7 = pnand %p647_p6, %p641_p2 }
  0x1b   : > { %651 = shalt.err (!%p648_p7)
}
  0x1c   : > { %574 = dma.hbm_to_vmem [thread:$0]  (!%p572_p12), %s889_s1, 64, %s174_s7, [#allocation3]  }
  0x1d   : > { %202 = sbr.rel (%p804_p10) target bundleno = 729 (0x2d9), region = 40 }
  0x22   : > { %695 = dma.done.wait (%p579_p9), [#allocation3], 64  }
  0x23   : > { %697 = vsyncadd (%p579_p9), [#allocation3], 4294967232  ;;  %p229_p8 = scmp.lt.s32.totalorder %s776_s22, 1  ;;  %v719_v2 = vmov 0.0   ;;  %vm720_vm0 = vmmov 0   ;;  %v721_v6 = vmov 0   ;;  %v343_v21 = vlaneseq }
  0x24   : > { %551 = vmatprep.subr.mxu0 %v719_v2  ;;  %558 = vmatprep.subr.mxu1 %v719_v2  ;;  %v255_v4 = vld [vmem:[%s890_s2] sm:$0xf]  ;;  %s722_s23 = smov 126   ;;  %s723_s25 = smov 2   ;;  %vm249_vm1 = vcmask 1031168   ;;  %vm253_vm2 = vcmask 1043456  }
  0x25   : > { %s230_s11 = scalar_select %p229_p8, %s776_s22, 1  ;;  %555 = vmatprep.mubr.msk.f32.mxu0 %vm720_vm0, %v719_v2  ;;  %562 = vmatprep.mubr.msk.f32.mxu1 %vm720_vm0, %v719_v2  ;;  %vm244_vm3 = vcmask 15360   ;;  %v239_v14 = vld [vmem:[#allocation2] sm:$0xf]  ;;  %vm261_vm4 = vcmask 97280   ;;  %v344_v22 = vand.u32 127, %v343_v21 }
  0x26   : > { %620 = vset.pattern.permute.xlu1 %v721_v6  ;;  %621 = vset.pattern.permute.xlu0 %v721_v6  ;;  %v360_v28 = vld [vmem:[%s892_s4] sm:$0xf]  ;;  %s226_s8 = sand.u32 1, %s708_s19   ;;  %s542_s10 = sshll.u32 %s776_s22, 6 }
  0x27   : > { %s536_s12 = sshll.u32 %s230_s11, 2  ;;  %258 = vperm.xlu1 %620, %v255_v4   ;;  %vm345_vm5 = vcmp.lt.s32.totalorder %v344_v22, 16  ;;  %v347_v35 = vld [vmem:[%s891_s3] sm:$0xf]  ;;  %s535_s9 = sshll.u32 %s226_s8, 2 }
  0x28   : > { %s232_s15 = scalar_lea.vmem %s888_s0, %s536_s12  ;;  %s228_s11 = scalar_lea.vmem [#allocation5], %s535_s9 }
  0x29   : > { %v826_v0 = vld [vmem:[%s232_s15] sm:$0xf]  ;;  %s458_s12 = sshll.u32 %s228_s11, 4  ;;  %s456_s15 = scalar_lea.hbm %s893_s5, %s542_s10  ;;  %s459_s12 = int_to_ptr.vmem [resolvable:$true] %s458_s12 }
  0x2a   : > { %v235_v1 = vmul.f32 0.70710677, %v826_v0  ;;  %v234_v3 = vmul.f32 0.5, %v826_v0  ;;  %s445_s16 = scalar_lea.sflag [#allocation4], %s226_s8  ;;  %s652_s17 = scalar_lea.vmem %s459_s12, 64 }
  0x2b   : > { %p653_p6 = scmp.ne.s32.totalorder %s459_s12, %s652_s17 }
  0x2c   : > { %622 = verf.f32 %v235_v1 }
  0x2d   : > { %p654_p9 = pnand %p653_p6, %p793_p5 }
  0x2f   : > { %p655_p10 = pneg %p654_p9 }
  0x39   : > { %v623_v5 = vpop.eup %622 }
  0x3a   : > { %v237_v7 = vadd.f32 1.0, %v623_v5 }
  0x3c   : > { %v238_v8 = vmul.f32 %v237_v7, %v234_v3 }
  0x3e   : > { %246 = vrot.lane.b32.xlu0 %v238_v8, %s722_s23  ;;  %v251_v11 = vrot.slane %v238_v8, 4 }
  0x42   : > { %241 = vrot.lane.b32.xlu0 %v238_v8, %s723_s25 }
  0xa2   : > { %v259_v16 = vpop.permute.xlu1 %258 }
  0xb0   : > { %v247_v9 = vpop.permute.xlu0 %246 }
  0xb1   : > { %v250_v10 = vsel %vm249_vm1, %v247_v9, 0.0 }
  0xb2   : > { %552 = vmatpush3.msk.msra.mxu0 %vm253_vm2, %v250_v10 }
  0xb3   : > { %553 = vmatprep.subr.mxu0 %v719_v2 }
  0xb4   : > { %v242_v12 = vpop.permute.xlu0 %241 }
  0xb5   : > { %v245_v13 = vsel %vm244_vm3, 0.0, %v242_v12 }
  0xb6   : > { %v254_v15 = vsel %vm253_vm2, %v245_v13, %v251_v11 }
  0xb7   : > { %554 = vmatpush3.msra.mxu0 %v254_v15 }
  0xb8   : > { %556 = vmatmul.mubr.msk.f32.vlgmr.msra.gmra.mxu0 %vm261_vm4, %v239_v14 }
 0x178   : > { %v334_v17 = vpop.f32.mrf.mxu0 }
 0x179   : > { %v335_v18 = vadd.f32 %v334_v17, %v259_v16 }
 0x17a   : > { %v557_v19 = vpop.f32.mrf.mxu0 }
 0x17b   : > { %v339_v20 = vmul.f32 0.70710677, %v335_v18  ;;  %v338_v24 = vmul.f32 0.5, %v335_v18 }
 0x17d   : > { %624 = verf.f32 %v339_v20 }
 0x18a   : > { %v625_v23 = vpop.eup %624 }
 0x18b   : > { %v341_v25 = vadd.f32 1.0, %v625_v23 }
 0x18d   : > { %v342_v26 = vmul.f32 %v341_v25, %v338_v24 }
 0x18f   : > { %v346_v27 = vsel %vm345_vm5, %v342_v26, 0.0 }
 0x190   : > { %349 = vrot.lane.b32.xlu0 %v346_v27, %s723_s25  ;;  %353 = vrot.lane.b32.xlu1 %v346_v27, %s722_s23  ;;  %v357_v29 = vrot.slane %v346_v27, 4  ;;  %s724_s23 = smov [#allocation5]  }
 0x191   : > { %s656_s22 = sshll.u32 %s724_s23, 4  ;;  %s657_s22 = int_to_ptr.vmem [resolvable:$false] %s656_s22 }
 0x192   : > { %s658_s25 = scalar_lea.vmem %s657_s22, 128  ;;  %p659_p11 = scmp.lt.s32.totalorder %s459_s12, %s657_s22 }
 0x193   : > { %p660_p12 = scmp.lt.s32.totalorder %s658_s25, %s652_s17 }
 0x194   : > { %363 = vperm.xlu1 %620, %v360_v28  }
 0x195   : > { %p661_p13 = por %p660_p12, %p659_p11 }
 0x197   : > { %p662_p0 = pnand %p661_p13, %p655_p10 }
 0x202   : > { %v350_v30 = vpop.permute.xlu0 %349  ;;  %v354_v31 = vpop.permute.xlu1 %353 }
 0x203   : > { %v352_v32 = vsel %vm244_vm3, 0.0, %v350_v30  ;;  %v356_v33 = vsel %vm249_vm1, %v354_v31, 0.0 }
 0x204   : > { %559 = vmatpush3.msk.msra.mxu1 %vm253_vm2, %v356_v33  ;;  %v359_v34 = vsel %vm253_vm2, %v352_v32, %v357_v29 }
 0x205   : > { %560 = vmatprep.subr.mxu1 %v719_v2 }
 0x206   : > { %561 = vmatpush3.msra.mxu1 %v359_v34 }
 0x207   : > { %563 = vmatmul.mubr.msk.f32.vlgmr.msra.gmra.mxu1 %vm261_vm4, %v347_v35 }
 0x20f   : > { %v364_v36 = vpop.permute.xlu1 %363 }
 0x2c7   : > { %v438_v37 = vpop.f32.mrf.mxu1 }
 0x2c8   : > { %v439_v38 = vadd.f32 %v438_v37, %v364_v36 }
 0x2c9   : > { %v564_v39 = vpop.f32.mrf.mxu1 }
 0x2ca   : > { %v442_v40 = vadd.f32 %v439_v38, %v826_v0 }
 0x2cc   : > { %443 = vst [vmem:[%s228_s11] sm:$0xf] %v442_v40 }
 0x2cd   : > { %665 = shalt.err (!%p662_p0)
}
 0x2ce   : > { %s666_s26 = scalar_lea.hbm %s456_s15, 64  ;;  %s670_s7 = scalar_lea.hbm %s893_s5, 128 }
 0x2cf   : > { %p667_p1 = scmp.ne.s32.totalorder %s456_s15, %s666_s26  ;;  %p671_p4 = scmp.lt.s32.totalorder %s456_s15, %s893_s5 }
 0x2d0   : > { %p672_p7 = scmp.lt.s32.totalorder %s670_s7, %s666_s26 }
 0x2d1   : > { %p668_p2 = pnand %p667_p1, %p793_p5 }
 0x2d2   : > { %p673_p8 = por %p672_p7, %p671_p4 }
 0x2d3   : > { %p669_p3 = pneg %p668_p2 }
 0x2d5   : > { %p674_p6 = pnand %p673_p8, %p669_p3 }
 0x2d7   : > { %677 = shalt.err (!%p674_p6)
}
 0x2d8   : > { %569 = dma.vmem_to_hbm [thread:$0]  (%p793_p5), %s459_s12, 64, %s456_s15, %s445_s16  }
 0x2d9 PF: > { %p581_p9 = scmp.ge.s32.totalorder %s716_s21, 2  ;;  %s470_s10 = sand.u32 1, %s704_s18  }
 0x2da   : > { %p897_p10 = scmp.ne.s32.totalorder %s895_s29, 0  ;;  %s471_s11 = scalar_lea.sflag [#allocation4], %s470_s10 }
 0x2dc   : > { %p576_p11 = pnand %p581_p9, %p897_p10 }
 0x2de   : > { %p577_p12 = pneg %p576_p11 }
 0x2e0   : > { %699 = dma.done.wait (%p577_p12), %s471_s11, 64  }
 0x2e1   : > { %701 = vsyncadd (%p577_p12), %s471_s11, 4294967232  ;;  %p16_p13 = scmp.ge.s32.totalorder %s780_s24, 4   ;;  %s898_s18 = smov %s708_s19 }
 0x2e2   : > { %s899_s19 = smov %s712_s20  ;;  %s900_s20 = smov %s791_s27 }
 0x2e3   : > { %s901_s21 = smov %s780_s24  ;;  %18 = sbr.rel (!%p16_p13) target bundleno = 4 (0x4), region = 80 }
 0x2e8   :  { %476 = vsyncpa [#allocation3], 1 }
 0x2e9   :  { %478 = vsyncpa [#allocation3 + $0x1], 1 }
 0x2ea   :  { %479 = vsyncpa [#allocation4], 1 }
 0x2eb   :  { %481 = vsyncpa [#allocation4 + $0x1], 1 }

</bundles_post_ra>
